<compile_context>
chip_gen: v5e
topology: v5e:2x2
jax: 0.10.0
libtpu: 0.0.40
codegen_flags: <defaults>
</compile_context>

<pallas_src>
import functools

import jax
import jax.numpy as jnp
from jax.experimental import pallas as pl
from jax.experimental.pallas import tpu as pltpu

_MIB = 1024 * 1024

# Wide, lane-dense row widths to try for the flattened (elementwise) view.
_FLAT_WIDTHS = (8192, 4096, 2048, 1024, 512, 256, 128)


def _add_const_kernel(v_ref, o_ref, *, add_val):
    # v_ref / o_ref: (TR, TC) tile in VMEM.  `add_val` is a compile-time python
    # scalar (weakly typed), so the add stays in v's dtype.  Integer dtypes
    # wrap if the constant is out of range (jnp semantics).
    o_ref[...] = v_ref[...] + add_val


def _tpu_budgets():
    """Per-generation (tile byte budget, scoped VMEM limit) for this streaming add."""
    try:
        kind = jax.devices()[0].device_kind.lower()
    except Exception:  # defensive: unknown runtime
        kind = ""
    if "v7" in kind:
        # 64 MiB physical VMEM per TensorCore: keep the 4 double-buffered tiles
        # (2 in + 2 out = 4 * 6 MiB = 24 MiB) under a 32 MiB scoped limit.
        return 6 * _MIB, 32 * _MIB
    if "v6" in kind or "v5" in kind:
        # 128 MiB physical VMEM: raise the scoped limit and use ~8 MiB tiles
        # (4 * 8 MiB = 32 MiB of buffers + headroom).
        return 8 * _MIB, 64 * _MIB
    # Unknown hardware: conservative defaults.
    return 4 * _MIB, 32 * _MIB


def _as_2d(v):
    """Lane-dense 2-D view of `v` (legal because the op is purely elementwise)."""
    n = v.size
    if v.ndim == 0:
        return v.reshape(1, 1)
    # Prefer a flattened (rows, W) view with W a wide multiple of 128: keeps
    # every output store lane-dense (unmasked vst) whatever the input layout.
    for w in _FLAT_WIDTHS:
        if n % w == 0:
            return v.reshape(n // w, w)
    # Fallback (size not a multiple of 128): keep the original trailing dim on
    # lanes; a block equal to the full trailing dim is always legal.
    if v.ndim == 1:
        return v.reshape(1, -1)
    return v.reshape(-1, v.shape[-1])


def _pick_tiles(rows, cols, itemsize, tile_budget):
    """Choose (tile_rows, tile_cols) honoring (8,128) layout rules and VMEM budget."""
    sublane = 8 * max(1, 4 // itemsize)  # 8 for f32, 16 for bf16, 32 for int8

    # Column (lane) tiling only if one sublane-high full-width strip would blow
    # the budget; tile_cols stays a multiple of 128 (ragged last block is OK).
    if cols <= 128 or sublane * cols * itemsize <= tile_budget:
        tile_cols = cols
    else:
        tile_cols = max(128, ((tile_budget // (sublane * itemsize)) // 128) * 128)
        tile_cols = min(tile_cols, cols)

    # Row (sublane) tiling: multiple of `sublane`, sized to the tile budget.
    if rows <= sublane:
        tile_rows = rows  # block == full dim is always legal
    else:
        max_rows = max(
            sublane,
            ((tile_budget // max(1, tile_cols * itemsize)) // sublane) * sublane,
        )
        tile_rows = min(rows, max_rows)
        # Guarantee >= 2 grid steps for arrays > 1 MiB so v7x's two TensorCores
        # both get work and the DMA/compute pipeline actually overlaps.
        total_bytes = rows * cols * itemsize
        if total_bytes > _MIB and tile_rows >= rows and tile_cols >= cols:
            tile_rows = pl.cdiv(rows, 2)
        tile_rows = max(sublane, (tile_rows // sublane) * sublane)

    return tile_rows, tile_cols


def test_module_forward(v: jax.Array, x: int, *, donate: bool = False) -> jax.Array:
    """Equivalent of TestModule(v).forward(x) -> self.x + x."""
    orig_shape = v.shape
    v2 = _as_2d(v)
    rows, cols = v2.shape
    itemsize = jnp.dtype(v2.dtype).itemsize

    tile_budget, vmem_limit = _tpu_budgets()
    tile_rows, tile_cols = _pick_tiles(rows, cols, itemsize, tile_budget)

    grid = (pl.cdiv(rows, tile_rows), pl.cdiv(cols, tile_cols))

    kernel = functools.partial(_add_const_kernel, add_val=x)

    out2 = pl.pallas_call(
        kernel,
        out_shape=jax.ShapeDtypeStruct((rows, cols), v2.dtype),
        grid=grid,
        in_specs=[pl.BlockSpec((tile_rows, tile_cols), lambda i, j: (i, j))],
        out_specs=pl.BlockSpec((tile_rows, tile_cols), lambda i, j: (i, j)),
        compiler_params=pltpu.CompilerParams(
            # Fully independent tiles: shard across both TCs on v7x.
            dimension_semantics=("parallel", "parallel"),
            vmem_limit_bytes=vmem_limit,
        ),
        cost_estimate=pl.CostEstimate(
            flops=rows * cols,
            transcendentals=0,
            bytes_accessed=2 * rows * cols * itemsize,
        ),
        # Only alias when the caller explicitly allows self.x to be overwritten
        # (TestModule semantically keeps self.x, so default is a fresh output).
        input_output_aliases={0: 0} if donate else {},
    )(v2)

    return out2.reshape(orig_shape)


if __name__ == "__main__":
    key = jax.random.PRNGKey(0)

    # Deterministic "module attribute" self.x.  2 MiB of f32 flattens to a
    # lane-dense (64, 8192) view and is split into >= 2 row tiles, exercising
    # the pipelined multi-step grid (and both TensorCores on v7x).
    v = jax.random.normal(key, (1024, 512), dtype=jnp.float32)

    # The python int passed to forward().
    x_int = 3

    out = test_module_forward(v, x_int)
    out = jax.block_until_ready(out)

    # Reference check against plain JAX semantics of `self.x + x`.
    ref = v + x_int
    assert out.shape == ref.shape and out.dtype == ref.dtype
    assert bool(jnp.allclose(out, ref)), "mismatch vs reference"

    print("KERNEL_OK")
</pallas_src>

<mosaic_0001>
module attributes {stable_mosaic.version = 11 : i64} {
  func.func @_add_const_kernel(%arg0: i32, %arg1: i32, %arg2: memref<32x8192xf32, #tpu.memory_space<vmem>>, %arg3: memref<32x8192xf32, #tpu.memory_space<vmem>>) attributes {dimension_semantics = [#tpu.dimension_semantics<parallel>, #tpu.dimension_semantics<parallel>], iteration_bounds = array<i64: 2, 1>, scalar_prefetch = 0 : i64, scratch_operands = 0 : i64, tpu.core_type = #tpu.core_type<tc>, window_params = [{transform_indices = @transform_0, window_bounds = array<i64: 32, 8192>}, {transform_indices = @transform_1, window_bounds = array<i64: 32, 8192>}]} {
    %c0 = arith.constant 0 : index
    %c0_0 = arith.constant 0 : index
    %0 = vector.load %arg2[%c0, %c0_0] : memref<32x8192xf32, #tpu.memory_space<vmem>>, vector<32x8192xf32>
    %cst = arith.constant 3.000000e+00 : f32
    %1 = vector.broadcast %cst : f32 to vector<32x8192xf32>
    %2 = arith.addf %0, %1 : vector<32x8192xf32>
    %c0_1 = arith.constant 0 : index
    %c0_2 = arith.constant 0 : index
    %3 = vector.load %arg3[%c0_1, %c0_2] : memref<32x8192xf32, #tpu.memory_space<vmem>>, vector<32x8192xf32>
    tpu.vector_store %arg3[%c0_1, %c0_2], %2 {strides = array<i32>} : memref<32x8192xf32, #tpu.memory_space<vmem>>, vector<32x8192xf32>,
    return
  }
  func.func @transform_0(%arg0: i32, %arg1: i32) -> (i32, i32) {
    %c0_i32 = arith.constant 0 : i32
    return %arg0, %arg1 : i32, i32
  }
  func.func @transform_1(%arg0: i32, %arg1: i32) -> (i32, i32) {
    %c0_i32 = arith.constant 0 : i32
    return %arg0, %arg1 : i32, i32
  }
}

</mosaic_0001>

<bundles_post_ra>
// kernel: tpu_custom_call.1
= control target key start
LH: loop header
LB: loop body
LE: loop exit
PB: predicated region body
PF: predicated region fallthrough
CT: control target
= control target key end

     0   :  { %6 = vsyncpa [#allocation3], 0  ;;  %s1886_s0 = inlined_call_operand.hbm [shape: f32[64,8192], index: 0, kind: input, shape index: {}]   ;;  %s1887_s1 = inlined_call_operand.hbm [shape: f32[64,8192], index: 1, kind: output, shape index: {}]  }
   0x1   :  { %8 = vsyncpa [#allocation3 + $0x1], 0 }
   0x2   :  { %9 = vsyncpa [#allocation4], 0 }
   0x3   :  { %11 = vsyncpa [#allocation4 + $0x1], 0  ;;  %s1249_s6 = smov 0   ;;  %s1251_s7 = smov 0  }
   0x4   :  { %s1253_s8 = smov 0   ;;  %s1255_s9 = smov 0  }
   0x5   :  { %s1257_s10 = smov 0   ;;  %s1259_s11 = smov 0  }
   0x6 LB: > { %s1034_s12 = sadd.s32 4294967295, %s1233_s11   ;;  %s1035_s13 = sadd.s32 4294967294, %s1233_s11   ;;  %s1233_s11 = sphi %s1259_s11, %s17_s11   ;;  %s1229_s10 = sphi %s1257_s10, %s1896_s10   ;;  %s1225_s9 = sphi %s1255_s9, %s1895_s9   ;;  %s1221_s8 = sphi %s1253_s8, %s1894_s8   ;;  %s1217_s7 = sphi %s1251_s7, %s1893_s7   ;;  %s1213_s6 = sphi %s1249_s6, %s1892_s6  }
   0x7   : > { %s29_s14 = sadd.s32 1, %s1229_s10  ;;  %s38_s15 = sadd.s32 1, %s1221_s8 }
   0x8   : > { %p31_p0 = scmp.ge.s32.totalorder %s29_s14, 2  ;;  %p45_p1 = scmp.ne.s32.totalorder %s1221_s8, %s1217_s7 }
   0x9   : > { %p46_p2 = scmp.eq.s32.totalorder %s1233_s11, 0  ;;  %p51_p3 = scmp.ne.s32.totalorder %s1217_s7, %s1213_s6 }
   0xa   : > { %s1898_s14 = smov (%p31_p0, %s29_s14), 0  ;;  %p52_p5 = scmp.eq.s32.totalorder %s1034_s12, 0 }
   0xb   : > { %p1290_p4 = por %p46_p2, %p45_p1  ;;  %s33_s17 = ssub.s32 %s1229_s10, %s1898_s14 }
   0xc   : > { %p77_p6 = scmp.eq.s32.totalorder %s1034_s12, 1  ;;  %p36_p7 = scmp.eq.s32.totalorder %s33_s17, 0 }
   0xd   : > { %p1296_p8 = por %p52_p5, %p51_p3  ;;  %p83_p10 = scmp.eq.s32.totalorder %s1035_s13, 1 }
   0xe   : > { %p1300_p9 = por %p77_p6, %p45_p1  ;;  %p1037_p12 = scmp.ge.s32.totalorder %s1233_s11, 2 }
   0xf   : > { %s1305_s20 = scalar_select %p36_p7, %s1221_s8, %s38_s15  }
  0x10   : > { %p1307_p11 = por %p83_p10, %p51_p3  ;;  %p1067_p13 = scmp.lt.s32.totalorder %s1233_s11, 2 }
  0x11   : > { %s103_s22 = sand.u32 1, %s1221_s8   ;;  %s1052_s24 = sshll.u32 %s1229_s10, 11 }
  0x12   : > { %s1038_s23 = sshll.u32 %s103_s22, 11  ;;  %s115_s27 = scalar_lea.hbm %s1886_s0, %s1052_s24 }
  0x13   : > { %s107_s28 = scalar_lea.vmem [#allocation2], %s1038_s23  ;;  %s116_s30 = sshll.u32 %s115_s27, 4  ;;  %s117_s30 = int_to_ptr.hbm [resolvable:$true] %s116_s30 }
  0x14   : > { %s118_s29 = sshll.u32 %s107_s28, 4  ;;  %p1060_p0 = pnand %p1067_p13, %p1290_p4  ;;  %s119_s29 = int_to_ptr.vmem [resolvable:$true] %s118_s29 }
  0x15   : > { %p1042_p1 = scmp.ge.s32.totalorder %s1233_s11, 1  ;;  %s104_s2 = scalar_lea.sflag [#allocation3], %s103_s22 }
  0x16   : > { %s1235_s3 = smov 8192   ;;  %s1236_s4 = smov 512  }
  0x17   : > { %1062 = dma.hbm_to_vmem [thread:$0]  (!%p1060_p0), %s117_s30, 32768, %s119_s29, %s104_s2, %s1235_s3, %s1235_s3, %s1236_s4  }
  0x18   : > { %p126_p2 = scmp.lt.s32.totalorder %s1233_s11, 3 }
  0x1a   : > { %p127_p3 = pnand %p1042_p1, %p126_p2 }
  0x1b   : > { %s1323_s5 = sand.u32 (!%p127_p3), 1, %s1217_s7  }
  0x1c   : > { %130 = sbr.rel (%p127_p3) target bundleno = 296 (0x128), region = 24  ;;  %s1043_s12 = sshll.u32 (!%p127_p3), %s1323_s5, 11 }
  0x1d   : > { %s133_s13 = scalar_lea.sflag (!%p127_p3), [#allocation3], %s1323_s5  ;;  %s1327_s15 = scalar_lea.vmem (!%p127_p3), [#allocation2], %s1043_s12 }
  0x21   : > { %1204 = dma.done.wait (%p1296_p8), %s133_s13, 32768  }
  0x22   : > { %1206 = vsyncadd (%p1296_p8), %s133_s13, 4294934528  ;;  %v160_v0 = vld [vmem:[%s1327_s15] sm:$0xff]  ;;  %v161_v1 = vld [vmem:[%s1327_s15 + $0x8] sm:$0xff]  ;;  %s1340_s16 = scalar_lea.vmem [#allocation5], %s1043_s12  ;;  %s1054_s17 = sshll.u32 %s1225_s9, 11 }
  0x23   : > { %v162_v2 = vld [vmem:[%s1327_s15 + $0x10] sm:$0xff]  ;;  %v416_v3 = vadd.f32 3.0, %v160_v0  ;;  %v417_v4 = vadd.f32 3.0, %v161_v1  ;;  %v163_v6 = vld [vmem:[%s1327_s15 + $0x18] sm:$0xff]  ;;  %v164_v7 = vld [vmem:[%s1327_s15 + $0x20] sm:$0xff]  ;;  %s943_s23 = scalar_lea.hbm %s1887_s1, %s1054_s17  ;;  %s944_s9 = sshll.u32 %s1340_s16, 4  ;;  %s945_s9 = int_to_ptr.vmem [resolvable:$true] %s944_s9 }
  0x24   : > { %v418_v5 = vadd.f32 3.0, %v162_v2  ;;  %v165_v8 = vld [vmem:[%s1327_s15 + $0x28] sm:$0xff]  ;;  %v419_v9 = vadd.f32 3.0, %v163_v6  ;;  %v166_v10 = vld [vmem:[%s1327_s15 + $0x30] sm:$0xff]  ;;  %v420_v11 = vadd.f32 3.0, %v164_v7  ;;  %v167_v12 = vld [vmem:[%s1327_s15 + $0x38] sm:$0xff] }
  0x25   : > { %672 = vst [vmem:[%s1340_s16] sm:$0xff] %v416_v3  ;;  %v421_v13 = vadd.f32 3.0, %v165_v8  ;;  %v168_v14 = vld [vmem:[%s1327_s15 + $0x40] sm:$0xff]  ;;  %v422_v15 = vadd.f32 3.0, %v166_v10  ;;  %v169_v16 = vld [vmem:[%s1327_s15 + $0x48] sm:$0xff]  ;;  %v423_v17 = vadd.f32 3.0, %v167_v12  ;;  %v170_v18 = vld [vmem:[%s1327_s15 + $0x50] sm:$0xff] }
  0x26   : > { %673 = vst [vmem:[%s1340_s16 + $0x8] sm:$0xff] %v417_v4  ;;  %v424_v19 = vadd.f32 3.0, %v168_v14  ;;  %v171_v20 = vld [vmem:[%s1327_s15 + $0x58] sm:$0xff]  ;;  %v425_v21 = vadd.f32 3.0, %v169_v16  ;;  %v172_v22 = vld [vmem:[%s1327_s15 + $0x60] sm:$0xff]  ;;  %v426_v23 = vadd.f32 3.0, %v170_v18 }
  0x27   : > { %674 = vst [vmem:[%s1340_s16 + $0x10] sm:$0xff] %v418_v5  ;;  %v173_v24 = vld [vmem:[%s1327_s15 + $0x68] sm:$0xff]  ;;  %v427_v25 = vadd.f32 3.0, %v171_v20  ;;  %v174_v26 = vld [vmem:[%s1327_s15 + $0x70] sm:$0xff]  ;;  %v428_v27 = vadd.f32 3.0, %v172_v22  ;;  %v175_v28 = vld [vmem:[%s1327_s15 + $0x78] sm:$0xff] }
  0x28   : > { %675 = vst [vmem:[%s1340_s16 + $0x18] sm:$0xff] %v419_v9  ;;  %v429_v29 = vadd.f32 3.0, %v173_v24  ;;  %v176_v30 = vld [vmem:[%s1327_s15 + $0x80] sm:$0xff]  ;;  %v430_v31 = vadd.f32 3.0, %v174_v26  ;;  %v177_v32 = vld [vmem:[%s1327_s15 + $0x88] sm:$0xff]  ;;  %v431_v33 = vadd.f32 3.0, %v175_v28 }
  0x29   : > { %676 = vst [vmem:[%s1340_s16 + $0x20] sm:$0xff] %v420_v11  ;;  %v178_v34 = vld [vmem:[%s1327_s15 + $0x90] sm:$0xff]  ;;  %v432_v35 = vadd.f32 3.0, %v176_v30  ;;  %v179_v36 = vld [vmem:[%s1327_s15 + $0x98] sm:$0xff]  ;;  %v433_v37 = vadd.f32 3.0, %v177_v32  ;;  %v180_v38 = vld [vmem:[%s1327_s15 + $0xa0] sm:$0xff] }
  0x2a   : > { %677 = vst [vmem:[%s1340_s16 + $0x28] sm:$0xff] %v421_v13  ;;  %v434_v39 = vadd.f32 3.0, %v178_v34  ;;  %v181_v40 = vld [vmem:[%s1327_s15 + $0xa8] sm:$0xff]  ;;  %v435_v41 = vadd.f32 3.0, %v179_v36  ;;  %v182_v42 = vld [vmem:[%s1327_s15 + $0xb0] sm:$0xff]  ;;  %v436_v43 = vadd.f32 3.0, %v180_v38 }
  0x2b   : > { %678 = vst [vmem:[%s1340_s16 + $0x30] sm:$0xff] %v422_v15  ;;  %v183_v44 = vld [vmem:[%s1327_s15 + $0xb8] sm:$0xff]  ;;  %v437_v45 = vadd.f32 3.0, %v181_v40  ;;  %v184_v46 = vld [vmem:[%s1327_s15 + $0xc0] sm:$0xff]  ;;  %v438_v47 = vadd.f32 3.0, %v182_v42  ;;  %v185_v48 = vld [vmem:[%s1327_s15 + $0xc8] sm:$0xff] }
  0x2c   : > { %679 = vst [vmem:[%s1340_s16 + $0x38] sm:$0xff] %v423_v17  ;;  %v439_v49 = vadd.f32 3.0, %v183_v44  ;;  %v186_v50 = vld [vmem:[%s1327_s15 + $0xd0] sm:$0xff]  ;;  %v440_v51 = vadd.f32 3.0, %v184_v46  ;;  %v187_v52 = vld [vmem:[%s1327_s15 + $0xd8] sm:$0xff]  ;;  %v441_v53 = vadd.f32 3.0, %v185_v48 }
  0x2d   : > { %680 = vst [vmem:[%s1340_s16 + $0x40] sm:$0xff] %v424_v19  ;;  %v188_v54 = vld [vmem:[%s1327_s15 + $0xe0] sm:$0xff]  ;;  %v442_v55 = vadd.f32 3.0, %v186_v50  ;;  %v189_v56 = vld [vmem:[%s1327_s15 + $0xe8] sm:$0xff]  ;;  %v443_v57 = vadd.f32 3.0, %v187_v52  ;;  %v190_v58 = vld [vmem:[%s1327_s15 + $0xf0] sm:$0xff] }
  0x2e   : > { %681 = vst [vmem:[%s1340_s16 + $0x48] sm:$0xff] %v425_v21  ;;  %v444_v59 = vadd.f32 3.0, %v188_v54  ;;  %v191_v60 = vld [vmem:[%s1327_s15 + $0xf8] sm:$0xff]  ;;  %v445_v61 = vadd.f32 3.0, %v189_v56  ;;  %v192_v62 = vld [vmem:[%s1327_s15 + $0x100] sm:$0xff]  ;;  %v446_v63 = vadd.f32 3.0, %v190_v58 }
  0x2f   : > { %682 = vst [vmem:[%s1340_s16 + $0x50] sm:$0xff] %v426_v23  ;;  %v193_v0 = vld [vmem:[%s1327_s15 + $0x108] sm:$0xff]  ;;  %v447_v1 = vadd.f32 3.0, %v191_v60  ;;  %v194_v2 = vld [vmem:[%s1327_s15 + $0x110] sm:$0xff]  ;;  %v448_v3 = vadd.f32 3.0, %v192_v62  ;;  %v195_v4 = vld [vmem:[%s1327_s15 + $0x118] sm:$0xff] }
  0x30   : > { %683 = vst [vmem:[%s1340_s16 + $0x58] sm:$0xff] %v427_v25  ;;  %v449_v5 = vadd.f32 3.0, %v193_v0  ;;  %v196_v6 = vld [vmem:[%s1327_s15 + $0x120] sm:$0xff]  ;;  %v450_v7 = vadd.f32 3.0, %v194_v2  ;;  %v197_v8 = vld [vmem:[%s1327_s15 + $0x128] sm:$0xff]  ;;  %v451_v9 = vadd.f32 3.0, %v195_v4 }
  0x31   : > { %684 = vst [vmem:[%s1340_s16 + $0x60] sm:$0xff] %v428_v27  ;;  %v198_v10 = vld [vmem:[%s1327_s15 + $0x130] sm:$0xff]  ;;  %v452_v11 = vadd.f32 3.0, %v196_v6  ;;  %v199_v12 = vld [vmem:[%s1327_s15 + $0x138] sm:$0xff]  ;;  %v453_v13 = vadd.f32 3.0, %v197_v8  ;;  %v200_v14 = vld [vmem:[%s1327_s15 + $0x140] sm:$0xff] }
  0x32   : > { %685 = vst [vmem:[%s1340_s16 + $0x68] sm:$0xff] %v429_v29  ;;  %v454_v15 = vadd.f32 3.0, %v198_v10  ;;  %v201_v16 = vld [vmem:[%s1327_s15 + $0x148] sm:$0xff]  ;;  %v455_v17 = vadd.f32 3.0, %v199_v12  ;;  %v202_v18 = vld [vmem:[%s1327_s15 + $0x150] sm:$0xff]  ;;  %v456_v19 = vadd.f32 3.0, %v200_v14 }
  0x33   : > { %686 = vst [vmem:[%s1340_s16 + $0x70] sm:$0xff] %v430_v31  ;;  %v203_v20 = vld [vmem:[%s1327_s15 + $0x158] sm:$0xff]  ;;  %v457_v21 = vadd.f32 3.0, %v201_v16  ;;  %v204_v22 = vld [vmem:[%s1327_s15 + $0x160] sm:$0xff]  ;;  %v458_v23 = vadd.f32 3.0, %v202_v18  ;;  %v205_v24 = vld [vmem:[%s1327_s15 + $0x168] sm:$0xff] }
  0x34   : > { %687 = vst [vmem:[%s1340_s16 + $0x78] sm:$0xff] %v431_v33  ;;  %v459_v25 = vadd.f32 3.0, %v203_v20  ;;  %v206_v26 = vld [vmem:[%s1327_s15 + $0x170] sm:$0xff]  ;;  %v460_v27 = vadd.f32 3.0, %v204_v22  ;;  %v207_v28 = vld [vmem:[%s1327_s15 + $0x178] sm:$0xff]  ;;  %v461_v29 = vadd.f32 3.0, %v205_v24 }
  0x35   : > { %688 = vst [vmem:[%s1340_s16 + $0x80] sm:$0xff] %v432_v35  ;;  %v208_v30 = vld [vmem:[%s1327_s15 + $0x180] sm:$0xff]  ;;  %v462_v31 = vadd.f32 3.0, %v206_v26  ;;  %v209_v32 = vld [vmem:[%s1327_s15 + $0x188] sm:$0xff]  ;;  %v463_v33 = vadd.f32 3.0, %v207_v28  ;;  %v210_v34 = vld [vmem:[%s1327_s15 + $0x190] sm:$0xff] }
  0x36   : > { %689 = vst [vmem:[%s1340_s16 + $0x88] sm:$0xff] %v433_v37  ;;  %v464_v35 = vadd.f32 3.0, %v208_v30  ;;  %v211_v36 = vld [vmem:[%s1327_s15 + $0x198] sm:$0xff]  ;;  %v465_v37 = vadd.f32 3.0, %v209_v32  ;;  %v212_v38 = vld [vmem:[%s1327_s15 + $0x1a0] sm:$0xff]  ;;  %v213_v40 = vld [vmem:[%s1327_s15 + $0x1a8] sm:$0xff] }
  0x37   : > { %690 = vst [vmem:[%s1340_s16 + $0x90] sm:$0xff] %v434_v39  ;;  %v466_v39 = vadd.f32 3.0, %v210_v34  ;;  %v214_v42 = vld [vmem:[%s1327_s15 + $0x1b0] sm:$0xff]  ;;  %v215_v44 = vld [vmem:[%s1327_s15 + $0x1b8] sm:$0xff]  ;;  %v216_v46 = vld [vmem:[%s1327_s15 + $0x1c0] sm:$0xff]  ;;  %s946_s24 = sshll.u32 %s943_s23, 4  ;;  %s947_s24 = int_to_ptr.hbm [resolvable:$true] %s946_s24 }
  0x38   : > { %691 = vst [vmem:[%s1340_s16 + $0x98] sm:$0xff] %v435_v41  ;;  %v467_v41 = vadd.f32 3.0, %v211_v36  ;;  %v217_v48 = vld [vmem:[%s1327_s15 + $0x1c8] sm:$0xff]  ;;  %v218_v50 = vld [vmem:[%s1327_s15 + $0x1d0] sm:$0xff]  ;;  %v219_v52 = vld [vmem:[%s1327_s15 + $0x1d8] sm:$0xff]  ;;  %s929_s25 = scalar_lea.sflag [#allocation4], %s1323_s5 }
  0x39   : > { %692 = vst [vmem:[%s1340_s16 + $0xa0] sm:$0xff] %v436_v43  ;;  %v468_v43 = vadd.f32 3.0, %v212_v38  ;;  %v220_v54 = vld [vmem:[%s1327_s15 + $0x1e0] sm:$0xff]  ;;  %v221_v56 = vld [vmem:[%s1327_s15 + $0x1e8] sm:$0xff]  ;;  %v222_v58 = vld [vmem:[%s1327_s15 + $0x1f0] sm:$0xff]  ;;  %s1165_s26 = sshra.s32 %s947_s24, 4  ;;  %s1166_s26 = int_to_ptr.hbm [resolvable:$true] %s1165_s26 }
  0x3a   : > { %693 = vst [vmem:[%s1340_s16 + $0xa8] sm:$0xff] %v437_v45  ;;  %v469_v45 = vadd.f32 3.0, %v213_v40  ;;  %v223_v60 = vld [vmem:[%s1327_s15 + $0x1f8] sm:$0xff]  ;;  %v224_v62 = vld [vmem:[%s1327_s15 + $0x200] sm:$0xff]  ;;  %v225_v0 = vld [vmem:[%s1327_s15 + $0x208] sm:$0xff]  ;;  %s1167_s27 = scalar_lea.hbm %s1166_s26, 2048  ;;  %p1172_p7 = scmp.lt.s32.totalorder %s1166_s26, %s1887_s1 }
  0x3b   : > { %694 = vst [vmem:[%s1340_s16 + $0xb0] sm:$0xff] %v438_v47  ;;  %v470_v47 = vadd.f32 3.0, %v214_v42  ;;  %v226_v2 = vld [vmem:[%s1327_s15 + $0x210] sm:$0xff]  ;;  %v227_v4 = vld [vmem:[%s1327_s15 + $0x218] sm:$0xff]  ;;  %v228_v6 = vld [vmem:[%s1327_s15 + $0x220] sm:$0xff]  ;;  %p1168_p4 = scmp.ne.s32.totalorder %s1166_s26, %s1167_s27  ;;  %s1171_s30 = scalar_lea.hbm %s1887_s1, 4096 }
  0x3c   : > { %695 = vst [vmem:[%s1340_s16 + $0xb8] sm:$0xff] %v439_v49  ;;  %v471_v49 = vadd.f32 3.0, %v215_v44  ;;  %v229_v8 = vld [vmem:[%s1327_s15 + $0x228] sm:$0xff]  ;;  %v230_v10 = vld [vmem:[%s1327_s15 + $0x230] sm:$0xff]  ;;  %v231_v12 = vld [vmem:[%s1327_s15 + $0x238] sm:$0xff]  ;;  %p1173_p8 = scmp.lt.s32.totalorder %s1171_s30, %s1167_s27 }
  0x3d   : > { %696 = vst [vmem:[%s1340_s16 + $0xc0] sm:$0xff] %v440_v51  ;;  %v472_v51 = vadd.f32 3.0, %v216_v46  ;;  %v232_v14 = vld [vmem:[%s1327_s15 + $0x240] sm:$0xff]  ;;  %v233_v16 = vld [vmem:[%s1327_s15 + $0x248] sm:$0xff]  ;;  %v234_v18 = vld [vmem:[%s1327_s15 + $0x250] sm:$0xff]  ;;  %p1169_p5 = pnand %p1168_p4, %p1300_p9 }
  0x3e   : > { %697 = vst [vmem:[%s1340_s16 + $0xc8] sm:$0xff] %v441_v53  ;;  %v473_v53 = vadd.f32 3.0, %v217_v48  ;;  %v235_v20 = vld [vmem:[%s1327_s15 + $0x258] sm:$0xff]  ;;  %v236_v22 = vld [vmem:[%s1327_s15 + $0x260] sm:$0xff]  ;;  %v237_v24 = vld [vmem:[%s1327_s15 + $0x268] sm:$0xff]  ;;  %p1174_p10 = por %p1173_p8, %p1172_p7 }
  0x3f   : > { %698 = vst [vmem:[%s1340_s16 + $0xd0] sm:$0xff] %v442_v55  ;;  %v474_v55 = vadd.f32 3.0, %v218_v50  ;;  %v238_v26 = vld [vmem:[%s1327_s15 + $0x270] sm:$0xff]  ;;  %v239_v28 = vld [vmem:[%s1327_s15 + $0x278] sm:$0xff]  ;;  %v240_v30 = vld [vmem:[%s1327_s15 + $0x280] sm:$0xff]  ;;  %p1170_p6 = pneg %p1169_p5 }
  0x40   : > { %699 = vst [vmem:[%s1340_s16 + $0xd8] sm:$0xff] %v443_v57  ;;  %v475_v57 = vadd.f32 3.0, %v219_v52  ;;  %v241_v32 = vld [vmem:[%s1327_s15 + $0x288] sm:$0xff]  ;;  %v242_v34 = vld [vmem:[%s1327_s15 + $0x290] sm:$0xff]  ;;  %v243_v36 = vld [vmem:[%s1327_s15 + $0x298] sm:$0xff] }
  0x41   : > { %700 = vst [vmem:[%s1340_s16 + $0xe0] sm:$0xff] %v444_v59  ;;  %v476_v59 = vadd.f32 3.0, %v220_v54  ;;  %v244_v38 = vld [vmem:[%s1327_s15 + $0x2a0] sm:$0xff]  ;;  %v245_v40 = vld [vmem:[%s1327_s15 + $0x2a8] sm:$0xff]  ;;  %v246_v42 = vld [vmem:[%s1327_s15 + $0x2b0] sm:$0xff]  ;;  %p1175_p13 = pnand %p1174_p10, %p1170_p6 }
  0x42   : > { %701 = vst [vmem:[%s1340_s16 + $0xe8] sm:$0xff] %v445_v61  ;;  %v477_v61 = vadd.f32 3.0, %v221_v56  ;;  %v247_v44 = vld [vmem:[%s1327_s15 + $0x2b8] sm:$0xff]  ;;  %v248_v46 = vld [vmem:[%s1327_s15 + $0x2c0] sm:$0xff]  ;;  %v249_v48 = vld [vmem:[%s1327_s15 + $0x2c8] sm:$0xff] }
  0x43   : > { %702 = vst [vmem:[%s1340_s16 + $0xf0] sm:$0xff] %v446_v63  ;;  %v478_v63 = vadd.f32 3.0, %v222_v58  ;;  %v250_v50 = vld [vmem:[%s1327_s15 + $0x2d0] sm:$0xff]  ;;  %v251_v52 = vld [vmem:[%s1327_s15 + $0x2d8] sm:$0xff]  ;;  %v252_v54 = vld [vmem:[%s1327_s15 + $0x2e0] sm:$0xff] }
  0x44   : > { %703 = vst [vmem:[%s1340_s16 + $0xf8] sm:$0xff] %v447_v1  ;;  %v479_v1 = vadd.f32 3.0, %v223_v60  ;;  %v253_v56 = vld [vmem:[%s1327_s15 + $0x2e8] sm:$0xff]  ;;  %v254_v58 = vld [vmem:[%s1327_s15 + $0x2f0] sm:$0xff]  ;;  %v255_v60 = vld [vmem:[%s1327_s15 + $0x2f8] sm:$0xff] }
  0x45   : > { %704 = vst [vmem:[%s1340_s16 + $0x100] sm:$0xff] %v448_v3  ;;  %v480_v3 = vadd.f32 3.0, %v224_v62  ;;  %v256_v62 = vld [vmem:[%s1327_s15 + $0x300] sm:$0xff] }
  0x46   : > { %705 = vst [vmem:[%s1340_s16 + $0x108] sm:$0xff] %v449_v5  ;;  %v481_v5 = vadd.f32 3.0, %v225_v0  ;;  %v257_v0 = vld [vmem:[%s1327_s15 + $0x308] sm:$0xff] }
  0x47   : > { %706 = vst [vmem:[%s1340_s16 + $0x110] sm:$0xff] %v450_v7  ;;  %v482_v7 = vadd.f32 3.0, %v226_v2  ;;  %v258_v2 = vld [vmem:[%s1327_s15 + $0x310] sm:$0xff] }
  0x48   : > { %707 = vst [vmem:[%s1340_s16 + $0x118] sm:$0xff] %v451_v9  ;;  %v483_v9 = vadd.f32 3.0, %v227_v4  ;;  %v259_v4 = vld [vmem:[%s1327_s15 + $0x318] sm:$0xff] }
  0x49   : > { %708 = vst [vmem:[%s1340_s16 + $0x120] sm:$0xff] %v452_v11  ;;  %v484_v11 = vadd.f32 3.0, %v228_v6  ;;  %v260_v6 = vld [vmem:[%s1327_s15 + $0x320] sm:$0xff] }
  0x4a   : > { %709 = vst [vmem:[%s1340_s16 + $0x128] sm:$0xff] %v453_v13  ;;  %v485_v13 = vadd.f32 3.0, %v229_v8  ;;  %v261_v8 = vld [vmem:[%s1327_s15 + $0x328] sm:$0xff] }
  0x4b   : > { %710 = vst [vmem:[%s1340_s16 + $0x130] sm:$0xff] %v454_v15  ;;  %v486_v15 = vadd.f32 3.0, %v230_v10  ;;  %v262_v10 = vld [vmem:[%s1327_s15 + $0x330] sm:$0xff] }
  0x4c   : > { %711 = vst [vmem:[%s1340_s16 + $0x138] sm:$0xff] %v455_v17  ;;  %v487_v17 = vadd.f32 3.0, %v231_v12  ;;  %v263_v12 = vld [vmem:[%s1327_s15 + $0x338] sm:$0xff] }
  0x4d   : > { %712 = vst [vmem:[%s1340_s16 + $0x140] sm:$0xff] %v456_v19  ;;  %v488_v19 = vadd.f32 3.0, %v232_v14  ;;  %v264_v14 = vld [vmem:[%s1327_s15 + $0x340] sm:$0xff] }
  0x4e   : > { %713 = vst [vmem:[%s1340_s16 + $0x148] sm:$0xff] %v457_v21  ;;  %v489_v21 = vadd.f32 3.0, %v233_v16  ;;  %v265_v16 = vld [vmem:[%s1327_s15 + $0x348] sm:$0xff] }
  0x4f   : > { %714 = vst [vmem:[%s1340_s16 + $0x150] sm:$0xff] %v458_v23  ;;  %v490_v23 = vadd.f32 3.0, %v234_v18  ;;  %v266_v18 = vld [vmem:[%s1327_s15 + $0x350] sm:$0xff] }
  0x50   : > { %715 = vst [vmem:[%s1340_s16 + $0x158] sm:$0xff] %v459_v25  ;;  %v491_v25 = vadd.f32 3.0, %v235_v20  ;;  %v267_v20 = vld [vmem:[%s1327_s15 + $0x358] sm:$0xff] }
  0x51   : > { %716 = vst [vmem:[%s1340_s16 + $0x160] sm:$0xff] %v460_v27  ;;  %v492_v27 = vadd.f32 3.0, %v236_v22  ;;  %v268_v22 = vld [vmem:[%s1327_s15 + $0x360] sm:$0xff] }
  0x52   : > { %717 = vst [vmem:[%s1340_s16 + $0x168] sm:$0xff] %v461_v29  ;;  %v493_v29 = vadd.f32 3.0, %v237_v24  ;;  %v269_v24 = vld [vmem:[%s1327_s15 + $0x368] sm:$0xff] }
  0x53   : > { %718 = vst [vmem:[%s1340_s16 + $0x170] sm:$0xff] %v462_v31  ;;  %v494_v31 = vadd.f32 3.0, %v238_v26  ;;  %v270_v26 = vld [vmem:[%s1327_s15 + $0x370] sm:$0xff] }
  0x54   : > { %719 = vst [vmem:[%s1340_s16 + $0x178] sm:$0xff] %v463_v33  ;;  %v495_v33 = vadd.f32 3.0, %v239_v28  ;;  %v271_v28 = vld [vmem:[%s1327_s15 + $0x378] sm:$0xff] }
  0x55   : > { %720 = vst [vmem:[%s1340_s16 + $0x180] sm:$0xff] %v464_v35  ;;  %v496_v35 = vadd.f32 3.0, %v240_v30  ;;  %v272_v30 = vld [vmem:[%s1327_s15 + $0x380] sm:$0xff] }
  0x56   : > { %721 = vst [vmem:[%s1340_s16 + $0x188] sm:$0xff] %v465_v37  ;;  %v497_v37 = vadd.f32 3.0, %v241_v32  ;;  %v273_v32 = vld [vmem:[%s1327_s15 + $0x388] sm:$0xff] }
  0x57   : > { %722 = vst [vmem:[%s1340_s16 + $0x190] sm:$0xff] %v466_v39  ;;  %v498_v39 = vadd.f32 3.0, %v242_v34  ;;  %v274_v34 = vld [vmem:[%s1327_s15 + $0x390] sm:$0xff] }
  0x58   : > { %723 = vst [vmem:[%s1340_s16 + $0x198] sm:$0xff] %v467_v41  ;;  %v499_v41 = vadd.f32 3.0, %v243_v36  ;;  %v275_v36 = vld [vmem:[%s1327_s15 + $0x398] sm:$0xff] }
  0x59   : > { %724 = vst [vmem:[%s1340_s16 + $0x1a0] sm:$0xff] %v468_v43  ;;  %v500_v43 = vadd.f32 3.0, %v244_v38  ;;  %v276_v38 = vld [vmem:[%s1327_s15 + $0x3a0] sm:$0xff] }
  0x5a   : > { %725 = vst [vmem:[%s1340_s16 + $0x1a8] sm:$0xff] %v469_v45  ;;  %v501_v45 = vadd.f32 3.0, %v245_v40  ;;  %v277_v40 = vld [vmem:[%s1327_s15 + $0x3a8] sm:$0xff] }
  0x5b   : > { %726 = vst [vmem:[%s1340_s16 + $0x1b0] sm:$0xff] %v470_v47  ;;  %v502_v47 = vadd.f32 3.0, %v246_v42  ;;  %v278_v42 = vld [vmem:[%s1327_s15 + $0x3b0] sm:$0xff] }
  0x5c   : > { %727 = vst [vmem:[%s1340_s16 + $0x1b8] sm:$0xff] %v471_v49  ;;  %v503_v49 = vadd.f32 3.0, %v247_v44  ;;  %v279_v44 = vld [vmem:[%s1327_s15 + $0x3b8] sm:$0xff] }
  0x5d   : > { %728 = vst [vmem:[%s1340_s16 + $0x1c0] sm:$0xff] %v472_v51  ;;  %v504_v51 = vadd.f32 3.0, %v248_v46  ;;  %v280_v46 = vld [vmem:[%s1327_s15 + $0x3c0] sm:$0xff] }
  0x5e   : > { %729 = vst [vmem:[%s1340_s16 + $0x1c8] sm:$0xff] %v473_v53  ;;  %v505_v53 = vadd.f32 3.0, %v249_v48  ;;  %v281_v48 = vld [vmem:[%s1327_s15 + $0x3c8] sm:$0xff] }
  0x5f   : > { %730 = vst [vmem:[%s1340_s16 + $0x1d0] sm:$0xff] %v474_v55  ;;  %v506_v55 = vadd.f32 3.0, %v250_v50  ;;  %v282_v50 = vld [vmem:[%s1327_s15 + $0x3d0] sm:$0xff] }
  0x60   : > { %731 = vst [vmem:[%s1340_s16 + $0x1d8] sm:$0xff] %v475_v57  ;;  %v507_v57 = vadd.f32 3.0, %v251_v52  ;;  %v283_v52 = vld [vmem:[%s1327_s15 + $0x3d8] sm:$0xff] }
  0x61   : > { %732 = vst [vmem:[%s1340_s16 + $0x1e0] sm:$0xff] %v476_v59  ;;  %v508_v59 = vadd.f32 3.0, %v252_v54  ;;  %v284_v54 = vld [vmem:[%s1327_s15 + $0x3e0] sm:$0xff] }
  0x62   : > { %733 = vst [vmem:[%s1340_s16 + $0x1e8] sm:$0xff] %v477_v61  ;;  %v509_v61 = vadd.f32 3.0, %v253_v56  ;;  %v285_v56 = vld [vmem:[%s1327_s15 + $0x3e8] sm:$0xff] }
  0x63   : > { %734 = vst [vmem:[%s1340_s16 + $0x1f0] sm:$0xff] %v478_v63  ;;  %v510_v63 = vadd.f32 3.0, %v254_v58  ;;  %v286_v58 = vld [vmem:[%s1327_s15 + $0x3f0] sm:$0xff] }
  0x64   : > { %735 = vst [vmem:[%s1340_s16 + $0x1f8] sm:$0xff] %v479_v1  ;;  %v511_v1 = vadd.f32 3.0, %v255_v60  ;;  %v287_v60 = vld [vmem:[%s1327_s15 + $0x3f8] sm:$0xff] }
  0x65   : > { %736 = vst [vmem:[%s1340_s16 + $0x200] sm:$0xff] %v480_v3  ;;  %v512_v3 = vadd.f32 3.0, %v256_v62  ;;  %v288_v62 = vld [vmem:[%s1327_s15 + $0x400] sm:$0xff] }
  0x66   : > { %737 = vst [vmem:[%s1340_s16 + $0x208] sm:$0xff] %v481_v5  ;;  %v513_v5 = vadd.f32 3.0, %v257_v0  ;;  %v289_v0 = vld [vmem:[%s1327_s15 + $0x408] sm:$0xff] }
  0x67   : > { %738 = vst [vmem:[%s1340_s16 + $0x210] sm:$0xff] %v482_v7  ;;  %v514_v7 = vadd.f32 3.0, %v258_v2  ;;  %v290_v2 = vld [vmem:[%s1327_s15 + $0x410] sm:$0xff] }
  0x68   : > { %739 = vst [vmem:[%s1340_s16 + $0x218] sm:$0xff] %v483_v9  ;;  %v515_v9 = vadd.f32 3.0, %v259_v4  ;;  %v291_v4 = vld [vmem:[%s1327_s15 + $0x418] sm:$0xff] }
  0x69   : > { %740 = vst [vmem:[%s1340_s16 + $0x220] sm:$0xff] %v484_v11  ;;  %v516_v11 = vadd.f32 3.0, %v260_v6  ;;  %v292_v6 = vld [vmem:[%s1327_s15 + $0x420] sm:$0xff] }
  0x6a   : > { %741 = vst [vmem:[%s1340_s16 + $0x228] sm:$0xff] %v485_v13  ;;  %v517_v13 = vadd.f32 3.0, %v261_v8  ;;  %v293_v8 = vld [vmem:[%s1327_s15 + $0x428] sm:$0xff] }
  0x6b   : > { %742 = vst [vmem:[%s1340_s16 + $0x230] sm:$0xff] %v486_v15  ;;  %v518_v15 = vadd.f32 3.0, %v262_v10  ;;  %v294_v10 = vld [vmem:[%s1327_s15 + $0x430] sm:$0xff] }
  0x6c   : > { %743 = vst [vmem:[%s1340_s16 + $0x238] sm:$0xff] %v487_v17  ;;  %v519_v17 = vadd.f32 3.0, %v263_v12  ;;  %v295_v12 = vld [vmem:[%s1327_s15 + $0x438] sm:$0xff] }
  0x6d   : > { %744 = vst [vmem:[%s1340_s16 + $0x240] sm:$0xff] %v488_v19  ;;  %v520_v19 = vadd.f32 3.0, %v264_v14  ;;  %v296_v14 = vld [vmem:[%s1327_s15 + $0x440] sm:$0xff] }
  0x6e   : > { %745 = vst [vmem:[%s1340_s16 + $0x248] sm:$0xff] %v489_v21  ;;  %v521_v21 = vadd.f32 3.0, %v265_v16  ;;  %v297_v16 = vld [vmem:[%s1327_s15 + $0x448] sm:$0xff] }
  0x6f   : > { %746 = vst [vmem:[%s1340_s16 + $0x250] sm:$0xff] %v490_v23  ;;  %v522_v23 = vadd.f32 3.0, %v266_v18  ;;  %v298_v18 = vld [vmem:[%s1327_s15 + $0x450] sm:$0xff] }
  0x70   : > { %747 = vst [vmem:[%s1340_s16 + $0x258] sm:$0xff] %v491_v25  ;;  %v523_v25 = vadd.f32 3.0, %v267_v20  ;;  %v299_v20 = vld [vmem:[%s1327_s15 + $0x458] sm:$0xff] }
  0x71   : > { %748 = vst [vmem:[%s1340_s16 + $0x260] sm:$0xff] %v492_v27  ;;  %v524_v27 = vadd.f32 3.0, %v268_v22  ;;  %v300_v22 = vld [vmem:[%s1327_s15 + $0x460] sm:$0xff] }
  0x72   : > { %749 = vst [vmem:[%s1340_s16 + $0x268] sm:$0xff] %v493_v29  ;;  %v525_v29 = vadd.f32 3.0, %v269_v24  ;;  %v301_v24 = vld [vmem:[%s1327_s15 + $0x468] sm:$0xff] }
  0x73   : > { %750 = vst [vmem:[%s1340_s16 + $0x270] sm:$0xff] %v494_v31  ;;  %v526_v31 = vadd.f32 3.0, %v270_v26  ;;  %v302_v26 = vld [vmem:[%s1327_s15 + $0x470] sm:$0xff] }
  0x74   : > { %751 = vst [vmem:[%s1340_s16 + $0x278] sm:$0xff] %v495_v33  ;;  %v527_v33 = vadd.f32 3.0, %v271_v28  ;;  %v303_v28 = vld [vmem:[%s1327_s15 + $0x478] sm:$0xff] }
  0x75   : > { %752 = vst [vmem:[%s1340_s16 + $0x280] sm:$0xff] %v496_v35  ;;  %v528_v35 = vadd.f32 3.0, %v272_v30  ;;  %v304_v30 = vld [vmem:[%s1327_s15 + $0x480] sm:$0xff] }
  0x76   : > { %753 = vst [vmem:[%s1340_s16 + $0x288] sm:$0xff] %v497_v37  ;;  %v529_v37 = vadd.f32 3.0, %v273_v32  ;;  %v305_v32 = vld [vmem:[%s1327_s15 + $0x488] sm:$0xff] }
  0x77   : > { %754 = vst [vmem:[%s1340_s16 + $0x290] sm:$0xff] %v498_v39  ;;  %v530_v39 = vadd.f32 3.0, %v274_v34  ;;  %v306_v34 = vld [vmem:[%s1327_s15 + $0x490] sm:$0xff] }
  0x78   : > { %755 = vst [vmem:[%s1340_s16 + $0x298] sm:$0xff] %v499_v41  ;;  %v531_v41 = vadd.f32 3.0, %v275_v36  ;;  %v307_v36 = vld [vmem:[%s1327_s15 + $0x498] sm:$0xff] }
  0x79   : > { %756 = vst [vmem:[%s1340_s16 + $0x2a0] sm:$0xff] %v500_v43  ;;  %v532_v43 = vadd.f32 3.0, %v276_v38  ;;  %v308_v38 = vld [vmem:[%s1327_s15 + $0x4a0] sm:$0xff] }
  0x7a   : > { %757 = vst [vmem:[%s1340_s16 + $0x2a8] sm:$0xff] %v501_v45  ;;  %v533_v45 = vadd.f32 3.0, %v277_v40  ;;  %v309_v40 = vld [vmem:[%s1327_s15 + $0x4a8] sm:$0xff] }
  0x7b   : > { %758 = vst [vmem:[%s1340_s16 + $0x2b0] sm:$0xff] %v502_v47  ;;  %v534_v47 = vadd.f32 3.0, %v278_v42  ;;  %v310_v42 = vld [vmem:[%s1327_s15 + $0x4b0] sm:$0xff] }
  0x7c   : > { %759 = vst [vmem:[%s1340_s16 + $0x2b8] sm:$0xff] %v503_v49  ;;  %v535_v49 = vadd.f32 3.0, %v279_v44  ;;  %v311_v44 = vld [vmem:[%s1327_s15 + $0x4b8] sm:$0xff] }
  0x7d   : > { %760 = vst [vmem:[%s1340_s16 + $0x2c0] sm:$0xff] %v504_v51  ;;  %v536_v51 = vadd.f32 3.0, %v280_v46  ;;  %v312_v46 = vld [vmem:[%s1327_s15 + $0x4c0] sm:$0xff] }
  0x7e   : > { %761 = vst [vmem:[%s1340_s16 + $0x2c8] sm:$0xff] %v505_v53  ;;  %v537_v53 = vadd.f32 3.0, %v281_v48  ;;  %v313_v48 = vld [vmem:[%s1327_s15 + $0x4c8] sm:$0xff] }
  0x7f   : > { %762 = vst [vmem:[%s1340_s16 + $0x2d0] sm:$0xff] %v506_v55  ;;  %v538_v55 = vadd.f32 3.0, %v282_v50  ;;  %v314_v50 = vld [vmem:[%s1327_s15 + $0x4d0] sm:$0xff] }
  0x80   : > { %763 = vst [vmem:[%s1340_s16 + $0x2d8] sm:$0xff] %v507_v57  ;;  %v539_v57 = vadd.f32 3.0, %v283_v52  ;;  %v315_v52 = vld [vmem:[%s1327_s15 + $0x4d8] sm:$0xff] }
  0x81   : > { %764 = vst [vmem:[%s1340_s16 + $0x2e0] sm:$0xff] %v508_v59  ;;  %v540_v59 = vadd.f32 3.0, %v284_v54  ;;  %v316_v54 = vld [vmem:[%s1327_s15 + $0x4e0] sm:$0xff] }
  0x82   : > { %765 = vst [vmem:[%s1340_s16 + $0x2e8] sm:$0xff] %v509_v61  ;;  %v541_v61 = vadd.f32 3.0, %v285_v56  ;;  %v317_v56 = vld [vmem:[%s1327_s15 + $0x4e8] sm:$0xff] }
  0x83   : > { %766 = vst [vmem:[%s1340_s16 + $0x2f0] sm:$0xff] %v510_v63  ;;  %v542_v63 = vadd.f32 3.0, %v286_v58  ;;  %v318_v58 = vld [vmem:[%s1327_s15 + $0x4f0] sm:$0xff] }
  0x84   : > { %767 = vst [vmem:[%s1340_s16 + $0x2f8] sm:$0xff] %v511_v1  ;;  %v543_v1 = vadd.f32 3.0, %v287_v60  ;;  %v319_v60 = vld [vmem:[%s1327_s15 + $0x4f8] sm:$0xff] }
  0x85   : > { %768 = vst [vmem:[%s1340_s16 + $0x300] sm:$0xff] %v512_v3  ;;  %v544_v3 = vadd.f32 3.0, %v288_v62  ;;  %v320_v62 = vld [vmem:[%s1327_s15 + $0x500] sm:$0xff] }
  0x86   : > { %769 = vst [vmem:[%s1340_s16 + $0x308] sm:$0xff] %v513_v5  ;;  %v545_v5 = vadd.f32 3.0, %v289_v0  ;;  %v321_v0 = vld [vmem:[%s1327_s15 + $0x508] sm:$0xff] }
  0x87   : > { %770 = vst [vmem:[%s1340_s16 + $0x310] sm:$0xff] %v514_v7  ;;  %v546_v7 = vadd.f32 3.0, %v290_v2  ;;  %v322_v2 = vld [vmem:[%s1327_s15 + $0x510] sm:$0xff] }
  0x88   : > { %771 = vst [vmem:[%s1340_s16 + $0x318] sm:$0xff] %v515_v9  ;;  %v547_v9 = vadd.f32 3.0, %v291_v4  ;;  %v323_v4 = vld [vmem:[%s1327_s15 + $0x518] sm:$0xff] }
  0x89   : > { %772 = vst [vmem:[%s1340_s16 + $0x320] sm:$0xff] %v516_v11  ;;  %v548_v11 = vadd.f32 3.0, %v292_v6  ;;  %v324_v6 = vld [vmem:[%s1327_s15 + $0x520] sm:$0xff] }
  0x8a   : > { %773 = vst [vmem:[%s1340_s16 + $0x328] sm:$0xff] %v517_v13  ;;  %v549_v13 = vadd.f32 3.0, %v293_v8  ;;  %v325_v8 = vld [vmem:[%s1327_s15 + $0x528] sm:$0xff] }
  0x8b   : > { %774 = vst [vmem:[%s1340_s16 + $0x330] sm:$0xff] %v518_v15  ;;  %v550_v15 = vadd.f32 3.0, %v294_v10  ;;  %v326_v10 = vld [vmem:[%s1327_s15 + $0x530] sm:$0xff] }
  0x8c   : > { %775 = vst [vmem:[%s1340_s16 + $0x338] sm:$0xff] %v519_v17  ;;  %v551_v17 = vadd.f32 3.0, %v295_v12  ;;  %v327_v12 = vld [vmem:[%s1327_s15 + $0x538] sm:$0xff] }
  0x8d   : > { %776 = vst [vmem:[%s1340_s16 + $0x340] sm:$0xff] %v520_v19  ;;  %v552_v19 = vadd.f32 3.0, %v296_v14  ;;  %v328_v14 = vld [vmem:[%s1327_s15 + $0x540] sm:$0xff] }
  0x8e   : > { %777 = vst [vmem:[%s1340_s16 + $0x348] sm:$0xff] %v521_v21  ;;  %v553_v21 = vadd.f32 3.0, %v297_v16  ;;  %v329_v16 = vld [vmem:[%s1327_s15 + $0x548] sm:$0xff] }
  0x8f   : > { %778 = vst [vmem:[%s1340_s16 + $0x350] sm:$0xff] %v522_v23  ;;  %v554_v23 = vadd.f32 3.0, %v298_v18  ;;  %v330_v18 = vld [vmem:[%s1327_s15 + $0x550] sm:$0xff] }
  0x90   : > { %779 = vst [vmem:[%s1340_s16 + $0x358] sm:$0xff] %v523_v25  ;;  %v555_v25 = vadd.f32 3.0, %v299_v20  ;;  %v331_v20 = vld [vmem:[%s1327_s15 + $0x558] sm:$0xff] }
  0x91   : > { %780 = vst [vmem:[%s1340_s16 + $0x360] sm:$0xff] %v524_v27  ;;  %v556_v27 = vadd.f32 3.0, %v300_v22  ;;  %v332_v22 = vld [vmem:[%s1327_s15 + $0x560] sm:$0xff] }
  0x92   : > { %781 = vst [vmem:[%s1340_s16 + $0x368] sm:$0xff] %v525_v29  ;;  %v557_v29 = vadd.f32 3.0, %v301_v24  ;;  %v333_v24 = vld [vmem:[%s1327_s15 + $0x568] sm:$0xff] }
  0x93   : > { %782 = vst [vmem:[%s1340_s16 + $0x370] sm:$0xff] %v526_v31  ;;  %v558_v31 = vadd.f32 3.0, %v302_v26  ;;  %v334_v26 = vld [vmem:[%s1327_s15 + $0x570] sm:$0xff] }
  0x94   : > { %783 = vst [vmem:[%s1340_s16 + $0x378] sm:$0xff] %v527_v33  ;;  %v559_v33 = vadd.f32 3.0, %v303_v28  ;;  %v335_v28 = vld [vmem:[%s1327_s15 + $0x578] sm:$0xff] }
  0x95   : > { %784 = vst [vmem:[%s1340_s16 + $0x380] sm:$0xff] %v528_v35  ;;  %v560_v35 = vadd.f32 3.0, %v304_v30  ;;  %v336_v30 = vld [vmem:[%s1327_s15 + $0x580] sm:$0xff] }
  0x96   : > { %785 = vst [vmem:[%s1340_s16 + $0x388] sm:$0xff] %v529_v37  ;;  %v561_v37 = vadd.f32 3.0, %v305_v32  ;;  %v337_v32 = vld [vmem:[%s1327_s15 + $0x588] sm:$0xff] }
  0x97   : > { %786 = vst [vmem:[%s1340_s16 + $0x390] sm:$0xff] %v530_v39  ;;  %v562_v39 = vadd.f32 3.0, %v306_v34  ;;  %v338_v34 = vld [vmem:[%s1327_s15 + $0x590] sm:$0xff] }
  0x98   : > { %787 = vst [vmem:[%s1340_s16 + $0x398] sm:$0xff] %v531_v41  ;;  %v563_v41 = vadd.f32 3.0, %v307_v36  ;;  %v339_v36 = vld [vmem:[%s1327_s15 + $0x598] sm:$0xff] }
  0x99   : > { %788 = vst [vmem:[%s1340_s16 + $0x3a0] sm:$0xff] %v532_v43  ;;  %v564_v43 = vadd.f32 3.0, %v308_v38  ;;  %v340_v38 = vld [vmem:[%s1327_s15 + $0x5a0] sm:$0xff] }
  0x9a   : > { %789 = vst [vmem:[%s1340_s16 + $0x3a8] sm:$0xff] %v533_v45  ;;  %v565_v45 = vadd.f32 3.0, %v309_v40  ;;  %v341_v40 = vld [vmem:[%s1327_s15 + $0x5a8] sm:$0xff] }
  0x9b   : > { %790 = vst [vmem:[%s1340_s16 + $0x3b0] sm:$0xff] %v534_v47  ;;  %v566_v47 = vadd.f32 3.0, %v310_v42  ;;  %v342_v42 = vld [vmem:[%s1327_s15 + $0x5b0] sm:$0xff] }
  0x9c   : > { %791 = vst [vmem:[%s1340_s16 + $0x3b8] sm:$0xff] %v535_v49  ;;  %v567_v49 = vadd.f32 3.0, %v311_v44  ;;  %v343_v44 = vld [vmem:[%s1327_s15 + $0x5b8] sm:$0xff] }
  0x9d   : > { %792 = vst [vmem:[%s1340_s16 + $0x3c0] sm:$0xff] %v536_v51  ;;  %v568_v51 = vadd.f32 3.0, %v312_v46  ;;  %v344_v46 = vld [vmem:[%s1327_s15 + $0x5c0] sm:$0xff] }
  0x9e   : > { %793 = vst [vmem:[%s1340_s16 + $0x3c8] sm:$0xff] %v537_v53  ;;  %v569_v53 = vadd.f32 3.0, %v313_v48  ;;  %v345_v48 = vld [vmem:[%s1327_s15 + $0x5c8] sm:$0xff] }
  0x9f   : > { %794 = vst [vmem:[%s1340_s16 + $0x3d0] sm:$0xff] %v538_v55  ;;  %v570_v55 = vadd.f32 3.0, %v314_v50  ;;  %v346_v50 = vld [vmem:[%s1327_s15 + $0x5d0] sm:$0xff] }
  0xa0   : > { %795 = vst [vmem:[%s1340_s16 + $0x3d8] sm:$0xff] %v539_v57  ;;  %v571_v57 = vadd.f32 3.0, %v315_v52  ;;  %v347_v52 = vld [vmem:[%s1327_s15 + $0x5d8] sm:$0xff] }
  0xa1   : > { %796 = vst [vmem:[%s1340_s16 + $0x3e0] sm:$0xff] %v540_v59  ;;  %v572_v59 = vadd.f32 3.0, %v316_v54  ;;  %v348_v54 = vld [vmem:[%s1327_s15 + $0x5e0] sm:$0xff] }
  0xa2   : > { %797 = vst [vmem:[%s1340_s16 + $0x3e8] sm:$0xff] %v541_v61  ;;  %v573_v61 = vadd.f32 3.0, %v317_v56  ;;  %v349_v56 = vld [vmem:[%s1327_s15 + $0x5e8] sm:$0xff] }
  0xa3   : > { %798 = vst [vmem:[%s1340_s16 + $0x3f0] sm:$0xff] %v542_v63  ;;  %v574_v63 = vadd.f32 3.0, %v318_v58  ;;  %v350_v58 = vld [vmem:[%s1327_s15 + $0x5f0] sm:$0xff] }
  0xa4   : > { %799 = vst [vmem:[%s1340_s16 + $0x3f8] sm:$0xff] %v543_v1  ;;  %v575_v1 = vadd.f32 3.0, %v319_v60  ;;  %v351_v60 = vld [vmem:[%s1327_s15 + $0x5f8] sm:$0xff] }
  0xa5   : > { %800 = vst [vmem:[%s1340_s16 + $0x400] sm:$0xff] %v544_v3  ;;  %v576_v3 = vadd.f32 3.0, %v320_v62  ;;  %v352_v62 = vld [vmem:[%s1327_s15 + $0x600] sm:$0xff] }
  0xa6   : > { %801 = vst [vmem:[%s1340_s16 + $0x408] sm:$0xff] %v545_v5  ;;  %v577_v5 = vadd.f32 3.0, %v321_v0  ;;  %v353_v0 = vld [vmem:[%s1327_s15 + $0x608] sm:$0xff] }
  0xa7   : > { %802 = vst [vmem:[%s1340_s16 + $0x410] sm:$0xff] %v546_v7  ;;  %v578_v7 = vadd.f32 3.0, %v322_v2  ;;  %v354_v2 = vld [vmem:[%s1327_s15 + $0x610] sm:$0xff] }
  0xa8   : > { %803 = vst [vmem:[%s1340_s16 + $0x418] sm:$0xff] %v547_v9  ;;  %v579_v9 = vadd.f32 3.0, %v323_v4  ;;  %v355_v4 = vld [vmem:[%s1327_s15 + $0x618] sm:$0xff] }
  0xa9   : > { %804 = vst [vmem:[%s1340_s16 + $0x420] sm:$0xff] %v548_v11  ;;  %v580_v11 = vadd.f32 3.0, %v324_v6  ;;  %v356_v6 = vld [vmem:[%s1327_s15 + $0x620] sm:$0xff] }
  0xaa   : > { %805 = vst [vmem:[%s1340_s16 + $0x428] sm:$0xff] %v549_v13  ;;  %v581_v13 = vadd.f32 3.0, %v325_v8  ;;  %v357_v8 = vld [vmem:[%s1327_s15 + $0x628] sm:$0xff] }
  0xab   : > { %806 = vst [vmem:[%s1340_s16 + $0x430] sm:$0xff] %v550_v15  ;;  %v582_v15 = vadd.f32 3.0, %v326_v10  ;;  %v358_v10 = vld [vmem:[%s1327_s15 + $0x630] sm:$0xff] }
  0xac   : > { %807 = vst [vmem:[%s1340_s16 + $0x438] sm:$0xff] %v551_v17  ;;  %v583_v17 = vadd.f32 3.0, %v327_v12  ;;  %v359_v12 = vld [vmem:[%s1327_s15 + $0x638] sm:$0xff] }
  0xad   : > { %808 = vst [vmem:[%s1340_s16 + $0x440] sm:$0xff] %v552_v19  ;;  %v584_v19 = vadd.f32 3.0, %v328_v14  ;;  %v360_v14 = vld [vmem:[%s1327_s15 + $0x640] sm:$0xff] }
  0xae   : > { %809 = vst [vmem:[%s1340_s16 + $0x448] sm:$0xff] %v553_v21  ;;  %v585_v21 = vadd.f32 3.0, %v329_v16  ;;  %v361_v16 = vld [vmem:[%s1327_s15 + $0x648] sm:$0xff] }
  0xaf   : > { %810 = vst [vmem:[%s1340_s16 + $0x450] sm:$0xff] %v554_v23  ;;  %v586_v23 = vadd.f32 3.0, %v330_v18  ;;  %v362_v18 = vld [vmem:[%s1327_s15 + $0x650] sm:$0xff] }
  0xb0   : > { %811 = vst [vmem:[%s1340_s16 + $0x458] sm:$0xff] %v555_v25  ;;  %v587_v25 = vadd.f32 3.0, %v331_v20  ;;  %v363_v20 = vld [vmem:[%s1327_s15 + $0x658] sm:$0xff] }
  0xb1   : > { %812 = vst [vmem:[%s1340_s16 + $0x460] sm:$0xff] %v556_v27  ;;  %v588_v27 = vadd.f32 3.0, %v332_v22  ;;  %v364_v22 = vld [vmem:[%s1327_s15 + $0x660] sm:$0xff] }
  0xb2   : > { %813 = vst [vmem:[%s1340_s16 + $0x468] sm:$0xff] %v557_v29  ;;  %v589_v29 = vadd.f32 3.0, %v333_v24  ;;  %v365_v24 = vld [vmem:[%s1327_s15 + $0x668] sm:$0xff] }
  0xb3   : > { %814 = vst [vmem:[%s1340_s16 + $0x470] sm:$0xff] %v558_v31  ;;  %v590_v31 = vadd.f32 3.0, %v334_v26  ;;  %v366_v26 = vld [vmem:[%s1327_s15 + $0x670] sm:$0xff] }
  0xb4   : > { %815 = vst [vmem:[%s1340_s16 + $0x478] sm:$0xff] %v559_v33  ;;  %v591_v33 = vadd.f32 3.0, %v335_v28  ;;  %v367_v28 = vld [vmem:[%s1327_s15 + $0x678] sm:$0xff] }
  0xb5   : > { %816 = vst [vmem:[%s1340_s16 + $0x480] sm:$0xff] %v560_v35  ;;  %v592_v35 = vadd.f32 3.0, %v336_v30  ;;  %v368_v30 = vld [vmem:[%s1327_s15 + $0x680] sm:$0xff] }
  0xb6   : > { %817 = vst [vmem:[%s1340_s16 + $0x488] sm:$0xff] %v561_v37  ;;  %v593_v37 = vadd.f32 3.0, %v337_v32  ;;  %v369_v32 = vld [vmem:[%s1327_s15 + $0x688] sm:$0xff] }
  0xb7   : > { %818 = vst [vmem:[%s1340_s16 + $0x490] sm:$0xff] %v562_v39  ;;  %v594_v39 = vadd.f32 3.0, %v338_v34  ;;  %v370_v34 = vld [vmem:[%s1327_s15 + $0x690] sm:$0xff] }
  0xb8   : > { %819 = vst [vmem:[%s1340_s16 + $0x498] sm:$0xff] %v563_v41  ;;  %v595_v41 = vadd.f32 3.0, %v339_v36  ;;  %v371_v36 = vld [vmem:[%s1327_s15 + $0x698] sm:$0xff] }
  0xb9   : > { %820 = vst [vmem:[%s1340_s16 + $0x4a0] sm:$0xff] %v564_v43  ;;  %v596_v43 = vadd.f32 3.0, %v340_v38  ;;  %v372_v38 = vld [vmem:[%s1327_s15 + $0x6a0] sm:$0xff] }
  0xba   : > { %821 = vst [vmem:[%s1340_s16 + $0x4a8] sm:$0xff] %v565_v45  ;;  %v597_v45 = vadd.f32 3.0, %v341_v40  ;;  %v373_v40 = vld [vmem:[%s1327_s15 + $0x6a8] sm:$0xff] }
  0xbb   : > { %822 = vst [vmem:[%s1340_s16 + $0x4b0] sm:$0xff] %v566_v47  ;;  %v598_v47 = vadd.f32 3.0, %v342_v42  ;;  %v374_v42 = vld [vmem:[%s1327_s15 + $0x6b0] sm:$0xff] }
  0xbc   : > { %823 = vst [vmem:[%s1340_s16 + $0x4b8] sm:$0xff] %v567_v49  ;;  %v599_v49 = vadd.f32 3.0, %v343_v44  ;;  %v375_v44 = vld [vmem:[%s1327_s15 + $0x6b8] sm:$0xff] }
  0xbd   : > { %824 = vst [vmem:[%s1340_s16 + $0x4c0] sm:$0xff] %v568_v51  ;;  %v600_v51 = vadd.f32 3.0, %v344_v46  ;;  %v376_v46 = vld [vmem:[%s1327_s15 + $0x6c0] sm:$0xff] }
  0xbe   : > { %825 = vst [vmem:[%s1340_s16 + $0x4c8] sm:$0xff] %v569_v53  ;;  %v601_v53 = vadd.f32 3.0, %v345_v48  ;;  %v377_v48 = vld [vmem:[%s1327_s15 + $0x6c8] sm:$0xff] }
  0xbf   : > { %826 = vst [vmem:[%s1340_s16 + $0x4d0] sm:$0xff] %v570_v55  ;;  %v602_v55 = vadd.f32 3.0, %v346_v50  ;;  %v378_v50 = vld [vmem:[%s1327_s15 + $0x6d0] sm:$0xff] }
  0xc0   : > { %827 = vst [vmem:[%s1340_s16 + $0x4d8] sm:$0xff] %v571_v57  ;;  %v603_v57 = vadd.f32 3.0, %v347_v52  ;;  %v379_v52 = vld [vmem:[%s1327_s15 + $0x6d8] sm:$0xff] }
  0xc1   : > { %828 = vst [vmem:[%s1340_s16 + $0x4e0] sm:$0xff] %v572_v59  ;;  %v604_v59 = vadd.f32 3.0, %v348_v54  ;;  %v380_v54 = vld [vmem:[%s1327_s15 + $0x6e0] sm:$0xff] }
  0xc2   : > { %829 = vst [vmem:[%s1340_s16 + $0x4e8] sm:$0xff] %v573_v61  ;;  %v605_v61 = vadd.f32 3.0, %v349_v56  ;;  %v381_v56 = vld [vmem:[%s1327_s15 + $0x6e8] sm:$0xff] }
  0xc3   : > { %830 = vst [vmem:[%s1340_s16 + $0x4f0] sm:$0xff] %v574_v63  ;;  %v606_v63 = vadd.f32 3.0, %v350_v58  ;;  %v382_v58 = vld [vmem:[%s1327_s15 + $0x6f0] sm:$0xff] }
  0xc4   : > { %831 = vst [vmem:[%s1340_s16 + $0x4f8] sm:$0xff] %v575_v1  ;;  %v607_v1 = vadd.f32 3.0, %v351_v60  ;;  %v383_v60 = vld [vmem:[%s1327_s15 + $0x6f8] sm:$0xff] }
  0xc5   : > { %832 = vst [vmem:[%s1340_s16 + $0x500] sm:$0xff] %v576_v3  ;;  %v608_v3 = vadd.f32 3.0, %v352_v62  ;;  %v384_v62 = vld [vmem:[%s1327_s15 + $0x700] sm:$0xff] }
  0xc6   : > { %833 = vst [vmem:[%s1340_s16 + $0x508] sm:$0xff] %v577_v5  ;;  %v609_v5 = vadd.f32 3.0, %v353_v0  ;;  %v385_v0 = vld [vmem:[%s1327_s15 + $0x708] sm:$0xff] }
  0xc7   : > { %834 = vst [vmem:[%s1340_s16 + $0x510] sm:$0xff] %v578_v7  ;;  %v610_v7 = vadd.f32 3.0, %v354_v2  ;;  %v386_v2 = vld [vmem:[%s1327_s15 + $0x710] sm:$0xff] }
  0xc8   : > { %835 = vst [vmem:[%s1340_s16 + $0x518] sm:$0xff] %v579_v9  ;;  %v611_v9 = vadd.f32 3.0, %v355_v4  ;;  %v387_v4 = vld [vmem:[%s1327_s15 + $0x718] sm:$0xff] }
  0xc9   : > { %836 = vst [vmem:[%s1340_s16 + $0x520] sm:$0xff] %v580_v11  ;;  %v612_v11 = vadd.f32 3.0, %v356_v6  ;;  %v388_v6 = vld [vmem:[%s1327_s15 + $0x720] sm:$0xff] }
  0xca   : > { %837 = vst [vmem:[%s1340_s16 + $0x528] sm:$0xff] %v581_v13  ;;  %v613_v13 = vadd.f32 3.0, %v357_v8  ;;  %v389_v8 = vld [vmem:[%s1327_s15 + $0x728] sm:$0xff] }
  0xcb   : > { %838 = vst [vmem:[%s1340_s16 + $0x530] sm:$0xff] %v582_v15  ;;  %v614_v15 = vadd.f32 3.0, %v358_v10  ;;  %v390_v10 = vld [vmem:[%s1327_s15 + $0x730] sm:$0xff] }
  0xcc   : > { %839 = vst [vmem:[%s1340_s16 + $0x538] sm:$0xff] %v583_v17  ;;  %v615_v17 = vadd.f32 3.0, %v359_v12  ;;  %v391_v12 = vld [vmem:[%s1327_s15 + $0x738] sm:$0xff] }
  0xcd   : > { %840 = vst [vmem:[%s1340_s16 + $0x540] sm:$0xff] %v584_v19  ;;  %v616_v19 = vadd.f32 3.0, %v360_v14  ;;  %v392_v14 = vld [vmem:[%s1327_s15 + $0x740] sm:$0xff] }
  0xce   : > { %841 = vst [vmem:[%s1340_s16 + $0x548] sm:$0xff] %v585_v21  ;;  %v617_v21 = vadd.f32 3.0, %v361_v16  ;;  %v393_v16 = vld [vmem:[%s1327_s15 + $0x748] sm:$0xff] }
  0xcf   : > { %842 = vst [vmem:[%s1340_s16 + $0x550] sm:$0xff] %v586_v23  ;;  %v618_v23 = vadd.f32 3.0, %v362_v18  ;;  %v394_v18 = vld [vmem:[%s1327_s15 + $0x750] sm:$0xff] }
  0xd0   : > { %843 = vst [vmem:[%s1340_s16 + $0x558] sm:$0xff] %v587_v25  ;;  %v619_v25 = vadd.f32 3.0, %v363_v20  ;;  %v395_v20 = vld [vmem:[%s1327_s15 + $0x758] sm:$0xff] }
  0xd1   : > { %844 = vst [vmem:[%s1340_s16 + $0x560] sm:$0xff] %v588_v27  ;;  %v620_v27 = vadd.f32 3.0, %v364_v22  ;;  %v396_v22 = vld [vmem:[%s1327_s15 + $0x760] sm:$0xff] }
  0xd2   : > { %845 = vst [vmem:[%s1340_s16 + $0x568] sm:$0xff] %v589_v29  ;;  %v621_v29 = vadd.f32 3.0, %v365_v24  ;;  %v397_v24 = vld [vmem:[%s1327_s15 + $0x768] sm:$0xff] }
  0xd3   : > { %846 = vst [vmem:[%s1340_s16 + $0x570] sm:$0xff] %v590_v31  ;;  %v622_v31 = vadd.f32 3.0, %v366_v26  ;;  %v398_v26 = vld [vmem:[%s1327_s15 + $0x770] sm:$0xff] }
  0xd4   : > { %847 = vst [vmem:[%s1340_s16 + $0x578] sm:$0xff] %v591_v33  ;;  %v623_v33 = vadd.f32 3.0, %v367_v28  ;;  %v399_v28 = vld [vmem:[%s1327_s15 + $0x778] sm:$0xff] }
  0xd5   : > { %848 = vst [vmem:[%s1340_s16 + $0x580] sm:$0xff] %v592_v35  ;;  %v624_v35 = vadd.f32 3.0, %v368_v30  ;;  %v400_v30 = vld [vmem:[%s1327_s15 + $0x780] sm:$0xff] }
  0xd6   : > { %849 = vst [vmem:[%s1340_s16 + $0x588] sm:$0xff] %v593_v37  ;;  %v625_v37 = vadd.f32 3.0, %v369_v32  ;;  %v401_v32 = vld [vmem:[%s1327_s15 + $0x788] sm:$0xff] }
  0xd7   : > { %850 = vst [vmem:[%s1340_s16 + $0x590] sm:$0xff] %v594_v39  ;;  %v626_v39 = vadd.f32 3.0, %v370_v34  ;;  %v402_v34 = vld [vmem:[%s1327_s15 + $0x790] sm:$0xff] }
  0xd8   : > { %851 = vst [vmem:[%s1340_s16 + $0x598] sm:$0xff] %v595_v41  ;;  %v627_v41 = vadd.f32 3.0, %v371_v36  ;;  %v403_v36 = vld [vmem:[%s1327_s15 + $0x798] sm:$0xff] }
  0xd9   : > { %852 = vst [vmem:[%s1340_s16 + $0x5a0] sm:$0xff] %v596_v43  ;;  %v628_v43 = vadd.f32 3.0, %v372_v38  ;;  %v404_v38 = vld [vmem:[%s1327_s15 + $0x7a0] sm:$0xff] }
  0xda   : > { %853 = vst [vmem:[%s1340_s16 + $0x5a8] sm:$0xff] %v597_v45  ;;  %v629_v45 = vadd.f32 3.0, %v373_v40  ;;  %v405_v40 = vld [vmem:[%s1327_s15 + $0x7a8] sm:$0xff] }
  0xdb   : > { %854 = vst [vmem:[%s1340_s16 + $0x5b0] sm:$0xff] %v598_v47  ;;  %v630_v47 = vadd.f32 3.0, %v374_v42  ;;  %v406_v42 = vld [vmem:[%s1327_s15 + $0x7b0] sm:$0xff] }
  0xdc   : > { %855 = vst [vmem:[%s1340_s16 + $0x5b8] sm:$0xff] %v599_v49  ;;  %v631_v49 = vadd.f32 3.0, %v375_v44  ;;  %v407_v44 = vld [vmem:[%s1327_s15 + $0x7b8] sm:$0xff] }
  0xdd   : > { %856 = vst [vmem:[%s1340_s16 + $0x5c0] sm:$0xff] %v600_v51  ;;  %v632_v51 = vadd.f32 3.0, %v376_v46  ;;  %v408_v46 = vld [vmem:[%s1327_s15 + $0x7c0] sm:$0xff] }
  0xde   : > { %857 = vst [vmem:[%s1340_s16 + $0x5c8] sm:$0xff] %v601_v53  ;;  %v633_v53 = vadd.f32 3.0, %v377_v48  ;;  %v409_v48 = vld [vmem:[%s1327_s15 + $0x7c8] sm:$0xff] }
  0xdf   : > { %858 = vst [vmem:[%s1340_s16 + $0x5d0] sm:$0xff] %v602_v55  ;;  %v634_v55 = vadd.f32 3.0, %v378_v50  ;;  %v410_v50 = vld [vmem:[%s1327_s15 + $0x7d0] sm:$0xff] }
  0xe0   : > { %859 = vst [vmem:[%s1340_s16 + $0x5d8] sm:$0xff] %v603_v57  ;;  %v635_v57 = vadd.f32 3.0, %v379_v52  ;;  %v411_v52 = vld [vmem:[%s1327_s15 + $0x7d8] sm:$0xff] }
  0xe1   : > { %860 = vst [vmem:[%s1340_s16 + $0x5e0] sm:$0xff] %v604_v59  ;;  %v636_v59 = vadd.f32 3.0, %v380_v54  ;;  %v412_v54 = vld [vmem:[%s1327_s15 + $0x7e0] sm:$0xff] }
  0xe2   : > { %861 = vst [vmem:[%s1340_s16 + $0x5e8] sm:$0xff] %v605_v61  ;;  %v637_v61 = vadd.f32 3.0, %v381_v56  ;;  %v413_v56 = vld [vmem:[%s1327_s15 + $0x7e8] sm:$0xff] }
  0xe3   : > { %862 = vst [vmem:[%s1340_s16 + $0x5f0] sm:$0xff] %v606_v63  ;;  %v638_v63 = vadd.f32 3.0, %v382_v58  ;;  %v414_v58 = vld [vmem:[%s1327_s15 + $0x7f0] sm:$0xff] }
  0xe4   : > { %863 = vst [vmem:[%s1340_s16 + $0x5f8] sm:$0xff] %v607_v1  ;;  %v639_v1 = vadd.f32 3.0, %v383_v60  ;;  %v415_v60 = vld [vmem:[%s1327_s15 + $0x7f8] sm:$0xff] }
  0xe5   : > { %864 = vst [vmem:[%s1340_s16 + $0x600] sm:$0xff] %v608_v3  ;;  %v640_v3 = vadd.f32 3.0, %v384_v62  ;;  %v670_v62 = vadd.f32 3.0, %v414_v58 }
  0xe6   : > { %865 = vst [vmem:[%s1340_s16 + $0x608] sm:$0xff] %v609_v5  ;;  %v641_v5 = vadd.f32 3.0, %v385_v0 }
  0xe7   : > { %866 = vst [vmem:[%s1340_s16 + $0x610] sm:$0xff] %v610_v7  ;;  %v642_v7 = vadd.f32 3.0, %v386_v2 }
  0xe8   : > { %867 = vst [vmem:[%s1340_s16 + $0x618] sm:$0xff] %v611_v9  ;;  %v643_v9 = vadd.f32 3.0, %v387_v4 }
  0xe9   : > { %868 = vst [vmem:[%s1340_s16 + $0x620] sm:$0xff] %v612_v11  ;;  %v644_v11 = vadd.f32 3.0, %v388_v6 }
  0xea   : > { %869 = vst [vmem:[%s1340_s16 + $0x628] sm:$0xff] %v613_v13  ;;  %v645_v13 = vadd.f32 3.0, %v389_v8 }
  0xeb   : > { %870 = vst [vmem:[%s1340_s16 + $0x630] sm:$0xff] %v614_v15  ;;  %v646_v15 = vadd.f32 3.0, %v390_v10 }
  0xec   : > { %871 = vst [vmem:[%s1340_s16 + $0x638] sm:$0xff] %v615_v17  ;;  %v647_v17 = vadd.f32 3.0, %v391_v12 }
  0xed   : > { %872 = vst [vmem:[%s1340_s16 + $0x640] sm:$0xff] %v616_v19  ;;  %v648_v19 = vadd.f32 3.0, %v392_v14 }
  0xee   : > { %873 = vst [vmem:[%s1340_s16 + $0x648] sm:$0xff] %v617_v21  ;;  %v649_v21 = vadd.f32 3.0, %v393_v16 }
  0xef   : > { %874 = vst [vmem:[%s1340_s16 + $0x650] sm:$0xff] %v618_v23  ;;  %v650_v23 = vadd.f32 3.0, %v394_v18 }
  0xf0   : > { %875 = vst [vmem:[%s1340_s16 + $0x658] sm:$0xff] %v619_v25  ;;  %v651_v25 = vadd.f32 3.0, %v395_v20 }
  0xf1   : > { %876 = vst [vmem:[%s1340_s16 + $0x660] sm:$0xff] %v620_v27  ;;  %v652_v27 = vadd.f32 3.0, %v396_v22 }
  0xf2   : > { %877 = vst [vmem:[%s1340_s16 + $0x668] sm:$0xff] %v621_v29  ;;  %v653_v29 = vadd.f32 3.0, %v397_v24 }
  0xf3   : > { %878 = vst [vmem:[%s1340_s16 + $0x670] sm:$0xff] %v622_v31  ;;  %v654_v31 = vadd.f32 3.0, %v398_v26 }
  0xf4   : > { %879 = vst [vmem:[%s1340_s16 + $0x678] sm:$0xff] %v623_v33  ;;  %v655_v33 = vadd.f32 3.0, %v399_v28 }
  0xf5   : > { %880 = vst [vmem:[%s1340_s16 + $0x680] sm:$0xff] %v624_v35  ;;  %v656_v35 = vadd.f32 3.0, %v400_v30 }
  0xf6   : > { %881 = vst [vmem:[%s1340_s16 + $0x688] sm:$0xff] %v625_v37  ;;  %v657_v37 = vadd.f32 3.0, %v401_v32 }
  0xf7   : > { %882 = vst [vmem:[%s1340_s16 + $0x690] sm:$0xff] %v626_v39  ;;  %v658_v39 = vadd.f32 3.0, %v402_v34 }
  0xf8   : > { %883 = vst [vmem:[%s1340_s16 + $0x698] sm:$0xff] %v627_v41  ;;  %v659_v41 = vadd.f32 3.0, %v403_v36 }
  0xf9   : > { %884 = vst [vmem:[%s1340_s16 + $0x6a0] sm:$0xff] %v628_v43  ;;  %v660_v43 = vadd.f32 3.0, %v404_v38 }
  0xfa   : > { %885 = vst [vmem:[%s1340_s16 + $0x6a8] sm:$0xff] %v629_v45  ;;  %v661_v45 = vadd.f32 3.0, %v405_v40 }
  0xfb   : > { %886 = vst [vmem:[%s1340_s16 + $0x6b0] sm:$0xff] %v630_v47  ;;  %v662_v47 = vadd.f32 3.0, %v406_v42 }
  0xfc   : > { %887 = vst [vmem:[%s1340_s16 + $0x6b8] sm:$0xff] %v631_v49  ;;  %v663_v49 = vadd.f32 3.0, %v407_v44 }
  0xfd   : > { %888 = vst [vmem:[%s1340_s16 + $0x6c0] sm:$0xff] %v632_v51  ;;  %v664_v51 = vadd.f32 3.0, %v408_v46 }
  0xfe   : > { %889 = vst [vmem:[%s1340_s16 + $0x6c8] sm:$0xff] %v633_v53  ;;  %v665_v53 = vadd.f32 3.0, %v409_v48 }
  0xff   : > { %890 = vst [vmem:[%s1340_s16 + $0x6d0] sm:$0xff] %v634_v55  ;;  %v666_v55 = vadd.f32 3.0, %v410_v50 }
 0x100   : > { %891 = vst [vmem:[%s1340_s16 + $0x6d8] sm:$0xff] %v635_v57  ;;  %v667_v57 = vadd.f32 3.0, %v411_v52 }
 0x101   : > { %892 = vst [vmem:[%s1340_s16 + $0x6e0] sm:$0xff] %v636_v59  ;;  %v668_v59 = vadd.f32 3.0, %v412_v54 }
 0x102   : > { %893 = vst [vmem:[%s1340_s16 + $0x6e8] sm:$0xff] %v637_v61  ;;  %v669_v61 = vadd.f32 3.0, %v413_v56 }
 0x103   : > { %894 = vst [vmem:[%s1340_s16 + $0x6f0] sm:$0xff] %v638_v63  ;;  %v671_v63 = vadd.f32 3.0, %v415_v60 }
 0x104   : > { %895 = vst [vmem:[%s1340_s16 + $0x6f8] sm:$0xff] %v639_v1 }
 0x105   : > { %896 = vst [vmem:[%s1340_s16 + $0x700] sm:$0xff] %v640_v3 }
 0x106   : > { %897 = vst [vmem:[%s1340_s16 + $0x708] sm:$0xff] %v641_v5 }
 0x107   : > { %898 = vst [vmem:[%s1340_s16 + $0x710] sm:$0xff] %v642_v7 }
 0x108   : > { %899 = vst [vmem:[%s1340_s16 + $0x718] sm:$0xff] %v643_v9 }
 0x109   : > { %900 = vst [vmem:[%s1340_s16 + $0x720] sm:$0xff] %v644_v11 }
 0x10a   : > { %901 = vst [vmem:[%s1340_s16 + $0x728] sm:$0xff] %v645_v13 }
 0x10b   : > { %902 = vst [vmem:[%s1340_s16 + $0x730] sm:$0xff] %v646_v15 }
 0x10c   : > { %903 = vst [vmem:[%s1340_s16 + $0x738] sm:$0xff] %v647_v17 }
 0x10d   : > { %904 = vst [vmem:[%s1340_s16 + $0x740] sm:$0xff] %v648_v19 }
 0x10e   : > { %905 = vst [vmem:[%s1340_s16 + $0x748] sm:$0xff] %v649_v21 }
 0x10f   : > { %906 = vst [vmem:[%s1340_s16 + $0x750] sm:$0xff] %v650_v23 }
 0x110   : > { %907 = vst [vmem:[%s1340_s16 + $0x758] sm:$0xff] %v651_v25 }
 0x111   : > { %908 = vst [vmem:[%s1340_s16 + $0x760] sm:$0xff] %v652_v27 }
 0x112   : > { %909 = vst [vmem:[%s1340_s16 + $0x768] sm:$0xff] %v653_v29 }
 0x113   : > { %910 = vst [vmem:[%s1340_s16 + $0x770] sm:$0xff] %v654_v31 }
 0x114   : > { %911 = vst [vmem:[%s1340_s16 + $0x778] sm:$0xff] %v655_v33 }
 0x115   : > { %912 = vst [vmem:[%s1340_s16 + $0x780] sm:$0xff] %v656_v35 }
 0x116   : > { %913 = vst [vmem:[%s1340_s16 + $0x788] sm:$0xff] %v657_v37 }
 0x117   : > { %914 = vst [vmem:[%s1340_s16 + $0x790] sm:$0xff] %v658_v39 }
 0x118   : > { %915 = vst [vmem:[%s1340_s16 + $0x798] sm:$0xff] %v659_v41 }
 0x119   : > { %916 = vst [vmem:[%s1340_s16 + $0x7a0] sm:$0xff] %v660_v43 }
 0x11a   : > { %917 = vst [vmem:[%s1340_s16 + $0x7a8] sm:$0xff] %v661_v45 }
 0x11b   : > { %918 = vst [vmem:[%s1340_s16 + $0x7b0] sm:$0xff] %v662_v47 }
 0x11c   : > { %919 = vst [vmem:[%s1340_s16 + $0x7b8] sm:$0xff] %v663_v49 }
 0x11d   : > { %920 = vst [vmem:[%s1340_s16 + $0x7c0] sm:$0xff] %v664_v51 }
 0x11e   : > { %921 = vst [vmem:[%s1340_s16 + $0x7c8] sm:$0xff] %v665_v53 }
 0x11f   : > { %922 = vst [vmem:[%s1340_s16 + $0x7d0] sm:$0xff] %v666_v55 }
 0x120   : > { %923 = vst [vmem:[%s1340_s16 + $0x7d8] sm:$0xff] %v667_v57 }
 0x121   : > { %924 = vst [vmem:[%s1340_s16 + $0x7e0] sm:$0xff] %v668_v59 }
 0x122   : > { %925 = vst [vmem:[%s1340_s16 + $0x7e8] sm:$0xff] %v669_v61 }
 0x123   : > { %926 = vst [vmem:[%s1340_s16 + $0x7f0] sm:$0xff] %v670_v62 }
 0x124   : > { %927 = vst [vmem:[%s1340_s16 + $0x7f8] sm:$0xff] %v671_v63 }
 0x125   : > { %1178 = shalt.err (!%p1175_p13)
}
 0x126   : > { %s1237_s4 = smov 8192   ;;  %s1238_s5 = smov 512  }
 0x127   : > { %1057 = dma.vmem_to_hbm [thread:$0]  (%p1300_p9), %s945_s9, 32768, %s947_s24, %s929_s25, %s1237_s4, %s1237_s4, %s1238_s5  }
 0x128 PF: > { %s961_s12 = sand.u32 1, %s1213_s6   ;;  %p1064_p0 = pnand %p1037_p12, %p1307_p11 }
 0x129   : > { %s962_s13 = scalar_lea.sflag [#allocation4], %s961_s12 }
 0x12a   : > { %p1065_p1 = pneg %p1064_p0 }
 0x12c   : > { %1208 = dma.done.wait (%p1065_p1), %s962_s13, 32768  }
 0x12d   : > { %1210 = vsyncadd (%p1065_p1), %s962_s13, 4294934528  ;;  %s17_s11 = sadd.s32 1, %s1233_s11   ;;  %s1892_s6 = smov %s1217_s7 }
 0x12e   : > { %p14_p2 = scmp.ge.s32.totalorder %s17_s11, 4   ;;  %s1893_s7 = smov %s1221_s8 }
 0x12f   : > { %s1894_s8 = smov %s1305_s20  ;;  %s1895_s9 = smov %s1229_s10 }
 0x130   : > { %s1896_s10 = smov %s1898_s14  ;;  %16 = sbr.rel (!%p14_p2) target bundleno = 6 (0x6), region = 69 }
 0x135   :  { %968 = vsyncpa [#allocation3], 1 }
 0x136   :  { %970 = vsyncpa [#allocation3 + $0x1], 1 }
 0x137   :  { %971 = vsyncpa [#allocation4], 1 }
 0x138   :  { %973 = vsyncpa [#allocation4 + $0x1], 1 }

</bundles_post_ra>
